<compile_context>
chip_gen: v7x
topology: tpu7x:2x2x1
jax: 0.10.0
libtpu: 0.0.40
codegen_flags: <defaults>
</compile_context>

<pallas_src>
import functools

import jax
import jax.numpy as jnp
from jax.experimental import pallas as pl
from jax.experimental.pallas import tpu as pltpu


_SUBLANE = 8
_XLA_FASTPATH_BYTES = 256 << 10  # below this, plain XLA beats kernel launch overhead


def _round_up(x, m):
    return ((x + m - 1) // m) * m


def _cdiv(a, b):
    return -(-a // b)


def _device_kind():
    try:
        return jax.devices()[0].device_kind.lower()
    except Exception:
        return ""


def _xla_kl(post_mean, post_std, prior_mean, prior_logvar):
    """Fused XLA KL (reference and small-problem fast path)."""
    m1 = post_mean.astype(jnp.float32)
    s1 = post_std.astype(jnp.float32)
    m2 = prior_mean.astype(jnp.float32)[None, :]
    lv2 = prior_logvar.astype(jnp.float32)[None, :]
    s2 = jnp.exp(0.5 * lv2)
    kl = jnp.log(s2) - jnp.log(s1) + (s1**2 + (m1 - m2) ** 2) / (2.0 * s2**2) - 0.5
    return jnp.mean(jnp.sum(kl, axis=-1))


def _kl_partial_kernel(post_mean_ref, post_std_ref, prior_mean_ref, inv_2var2_ref, out_ref,
                       *, nt: int, tile_b: int, batch: int, ragged: bool):
    p = pl.program_id(0)
    t = pl.program_id(1)

    @pl.when(t == 0)
    def _():
        out_ref[...] = jnp.zeros_like(out_ref)

    m1 = post_mean_ref[...].astype(jnp.float32)   # (tile_b, D)
    s1 = post_std_ref[...].astype(jnp.float32)    # (tile_b, D)
    m2 = prior_mean_ref[...].astype(jnp.float32)  # (1, D) resident
    c = inv_2var2_ref[...].astype(jnp.float32)    # (1, D) = 0.5 / prior_var, resident

    diff = m1 - m2
    # Data-dependent part of the per-element KL; the batch-independent constant
    # sum_d(0.5*logvar_d - 0.5) is folded in once by the wrapper epilogue.
    elem = (s1 * s1 + diff * diff) * c - jnp.log(s1)  # (tile_b, D)

    tb, d = elem.shape

    def rowsum(x):
        # Sublane-group reduce to an (8, D) slab: pure VPU adds, no cross-lane XLU per step.
        return jnp.sum(x.reshape(tb // _SUBLANE, _SUBLANE, d), axis=0)

    if ragged:
        gidx = p * nt + t
        needs_mask = (gidx + 1) * tile_b > batch  # only tiles extending past B (cold path)

        @pl.when(jnp.logical_not(needs_mask))
        def _():
            out_ref[0] += rowsum(elem)

        @pl.when(needs_mask)
        def _():
            rows = gidx * tile_b + jax.lax.broadcasted_iota(jnp.int32, (tb, 1), 0)
            out_ref[0] += rowsum(jnp.where(rows < batch, elem, 0.0))
    else:
        out_ref[0] += rowsum(elem)


def multivariate_normal_kl(post_mean, post_std, prior_mean, prior_logvar, *, force_pallas=False):
    """Scalar KL(posterior || prior), mean over batch (matches the torch forward)."""
    B, D = post_mean.shape
    itemsize = jnp.dtype(post_mean.dtype).itemsize

    if not force_pallas and B * D * itemsize < _XLA_FASTPATH_BYTES:
        return _xla_kl(post_mean, post_std, prior_mean, prior_logvar)

    kind = _device_kind()
    tile_bytes = (2 << 20) if "v5" in kind else (4 << 20)   # per input block, per pipeline buffer

    # dtype-aware row granularity: 8 rows for f32, 16 for bf16, 32 for 1-byte types
    row_group = _SUBLANE * max(1, 4 // itemsize)

    b_grp = _round_up(B, row_group)
    tile_cap = max(row_group, (tile_bytes // max(1, D * itemsize)) // row_group * row_group)
    num_tiles = _cdiv(b_grp, tile_cap)
    n_parallel = 2 if num_tiles >= 2 else 1       # split batch across both TCs on v7x
    num_tiles = _round_up(num_tiles, n_parallel)
    tile_b = _round_up(_cdiv(b_grp, num_tiles), row_group)
    ragged = (tile_b * num_tiles) != B
    nt = num_tiles // n_parallel

    prior_mean_2d = prior_mean.astype(jnp.float32).reshape(1, D)
    inv_2var2 = (0.5 * jnp.exp(-prior_logvar.astype(jnp.float32))).reshape(1, D)

    kernel = functools.partial(_kl_partial_kernel, nt=nt, tile_b=tile_b, batch=B, ragged=ragged)

    # CORE_PARALLEL only where it exists/helps (2-TC v7x); plain PARALLEL on single-TC v5e/v6e.
    is_v7 = ("v7" in kind) or ("7x" in kind)
    lead_sem = pltpu.CORE_PARALLEL if (is_v7 and n_parallel == 2) else pltpu.PARALLEL

    partial_sums = pl.pallas_call(
        kernel,
        out_shape=jax.ShapeDtypeStruct((n_parallel, _SUBLANE, D), jnp.float32),
        grid_spec=pltpu.PrefetchScalarGridSpec(
            num_scalar_prefetch=0,
            grid=(n_parallel, nt),
            in_specs=[
                # Full-extent last dim D (no padding / no extra HBM traffic).
                pl.BlockSpec((tile_b, D), lambda p, t: (p * nt + t, 0)),  # post_mean
                pl.BlockSpec((tile_b, D), lambda p, t: (p * nt + t, 0)),  # post_std
                pl.BlockSpec((1, D), lambda p, t: (0, 0)),                # prior mean (resident)
                pl.BlockSpec((1, D), lambda p, t: (0, 0)),                # 0.5/prior_var (resident)
            ],
            out_specs=pl.BlockSpec((1, _SUBLANE, D), lambda p, t: (p, 0, 0)),
        ),
        compiler_params=pltpu.CompilerParams(
            dimension_semantics=(lead_sem, pltpu.ARBITRARY),
            vmem_limit_bytes=4 * tile_bytes + (4 << 20),
        ),
    )(post_mean, post_std, prior_mean_2d, inv_2var2)

    # Tiny XLA epilogue: one cross-lane reduce, mean over batch, plus the batch-independent
    # prior constant term sum_d(0.5*logvar_d - 0.5).
    const_term = jnp.sum(0.5 * prior_logvar.astype(jnp.float32) - 0.5)
    return jnp.sum(partial_sums) / jnp.float32(B) + const_term


if __name__ == "__main__":
    # Module "__init__" params: MultivariateNormal(mean=0.0, variance=0.1, shape=D)
    key = jax.random.PRNGKey(0)

    def make_inputs(B, D, mean_val=0.0, variance_val=0.1):
        k1, k2 = jax.random.split(jax.random.fold_in(key, B * 1000 + D))
        prior_mean = jnp.ones((D,), jnp.float32) * mean_val
        prior_logvar = jnp.log(jnp.ones((D,), jnp.float32) * variance_val)
        post_mean = jax.random.normal(k1, (B, D), jnp.float32)
        post_std = jnp.exp(0.1 * jax.random.normal(k2, (B, D), jnp.float32)) * 0.5  # positive std
        return post_mean, post_std, prior_mean, prior_logvar

    # 1) Pallas path, aligned rows, D not a multiple of 128 (no padding anywhere).
    args = make_inputs(16, 64)
    out = jax.block_until_ready(multivariate_normal_kl(*args, force_pallas=True))
    ref = _xla_kl(*args)
    assert jnp.allclose(out, ref, rtol=1e-5, atol=1e-4), (out, ref)

    # 2) Pallas path, ragged batch (masked final tile) and odd feature dim.
    args = make_inputs(13, 96)
    out = jax.block_until_ready(multivariate_normal_kl(*args, force_pallas=True))
    ref = _xla_kl(*args)
    assert jnp.allclose(out, ref, rtol=1e-5, atol=1e-4), (out, ref)

    # 3) Default call at the module's demo size takes the small-problem XLA fast path.
    args = make_inputs(16, 64)
    out = jax.block_until_ready(multivariate_normal_kl(*args))
    ref = _xla_kl(*args)
    assert jnp.allclose(out, ref, rtol=1e-5, atol=1e-4), (out, ref)

    print("KERNEL_OK")
</pallas_src>

<mosaic_0001>
module attributes {stable_mosaic.version = 11 : i64} {
  func.func @_kl_partial_kernel(%arg0: i32, %arg1: i32, %arg2: memref<16x64xf32, #tpu.memory_space<vmem>>, %arg3: memref<16x64xf32, #tpu.memory_space<vmem>>, %arg4: memref<1x64xf32, #tpu.memory_space<vmem>>, %arg5: memref<1x64xf32, #tpu.memory_space<vmem>>, %arg6: memref<1x8x64xf32, #tpu.memory_space<vmem>>) attributes {dimension_semantics = [#tpu.dimension_semantics<parallel>, #tpu.dimension_semantics<arbitrary>], iteration_bounds = array<i64: 1, 1>, scalar_prefetch = 0 : i64, scratch_operands = 0 : i64, tpu.core_type = #tpu.core_type<tc>, window_params = [{transform_indices = @transform_0, window_bounds = array<i64: 16, 64>}, {transform_indices = @transform_1, window_bounds = array<i64: 16, 64>}, {pipeline_mode = #tpu.pipeline_mode<synchronous>, transform_indices = @transform_2, window_bounds = array<i64: 1, 64>}, {pipeline_mode = #tpu.pipeline_mode<synchronous>, transform_indices = @transform_3, window_bounds = array<i64: 1, 64>}, {transform_indices = @transform_4, window_bounds = array<i64: 1, 8, 64>}]} {
    %c0_i32 = arith.constant 0 : i32
    %0 = arith.cmpi eq, %arg1, %c0_i32 : i32
    %1 = arith.extui %0 : i1 to i32
    %c0_i32_0 = arith.constant 0 : i32
    %2 = arith.cmpi ne, %1, %c0_i32_0 : i32
    scf.if %2 {
      %cst_14 = arith.constant 0.000000e+00 : f32
      %24 = vector.broadcast %cst_14 : f32 to vector<1x8x64xf32>
      %c0_15 = arith.constant 0 : index
      %c0_16 = arith.constant 0 : index
      %c0_17 = arith.constant 0 : index
      %25 = vector.load %arg6[%c0_15, %c0_16, %c0_17] : memref<1x8x64xf32, #tpu.memory_space<vmem>>, vector<1x8x64xf32>
      tpu.vector_store %arg6[%c0_15, %c0_16, %c0_17], %24 {strides = array<i32>} : memref<1x8x64xf32, #tpu.memory_space<vmem>>, vector<1x8x64xf32>,
    } else {
    }
    %c0 = arith.constant 0 : index
    %c0_1 = arith.constant 0 : index
    %3 = vector.load %arg2[%c0, %c0_1] : memref<16x64xf32, #tpu.memory_space<vmem>>, vector<16x64xf32>
    %c0_2 = arith.constant 0 : index
    %c0_3 = arith.constant 0 : index
    %4 = vector.load %arg3[%c0_2, %c0_3] : memref<16x64xf32, #tpu.memory_space<vmem>>, vector<16x64xf32>
    %c0_4 = arith.constant 0 : index
    %c0_5 = arith.constant 0 : index
    %5 = vector.load %arg4[%c0_4, %c0_5] : memref<1x64xf32, #tpu.memory_space<vmem>>, vector<1x64xf32>
    %c0_6 = arith.constant 0 : index
    %c0_7 = arith.constant 0 : index
    %6 = vector.load %arg5[%c0_6, %c0_7] : memref<1x64xf32, #tpu.memory_space<vmem>>, vector<1x64xf32>
    %7 = vector.broadcast %5 : vector<1x64xf32> to vector<16x64xf32>
    %8 = arith.subf %3, %7 : vector<16x64xf32>
    %9 = arith.mulf %4, %4 : vector<16x64xf32>
    %10 = arith.mulf %8, %8 : vector<16x64xf32>
    %11 = arith.addf %9, %10 : vector<16x64xf32>
    %12 = vector.broadcast %6 : vector<1x64xf32> to vector<16x64xf32>
    %13 = arith.mulf %11, %12 : vector<16x64xf32>
    %14 = math.log %4 : vector<16x64xf32>
    %15 = arith.subf %13, %14 : vector<16x64xf32>
    %c0_8 = arith.constant 0 : index
    %c0_9 = arith.constant 0 : index
    %c0_10 = arith.constant 0 : index
    %16 = vector.load %arg6[%c0_8, %c0_9, %c0_10] : memref<1x8x64xf32, #tpu.memory_space<vmem>>, vector<1x8x64xf32>
    %17 = vector.shape_cast %16 : vector<1x8x64xf32> to vector<8x64xf32>
    %18 = vector.shape_cast %15 : vector<16x64xf32> to vector<2x8x64xf32>
    %cst = arith.constant dense<0.000000e+00> : vector<8x64xf32>
    %19 = vector.multi_reduction <add>, %18, %cst [0] : vector<2x8x64xf32> to vector<8x64xf32>
    %20 = arith.addf %17, %19 : vector<8x64xf32>
    %c0_11 = arith.constant 0 : index
    %c0_12 = arith.constant 0 : index
    %c0_13 = arith.constant 0 : index
    %21 = vector.load %arg6[%c0_11, %c0_12, %c0_13] : memref<1x8x64xf32, #tpu.memory_space<vmem>>, vector<1x8x64xf32>
    %22 = vector.shape_cast %21 : vector<1x8x64xf32> to vector<8x64xf32>
    %23 = vector.shape_cast %20 : vector<8x64xf32> to vector<1x8x64xf32>
    tpu.vector_store %arg6[%c0_11, %c0_12, %c0_13], %23 {strides = array<i32>} : memref<1x8x64xf32, #tpu.memory_space<vmem>>, vector<1x8x64xf32>,
    return
  }
  func.func @transform_0(%arg0: i32, %arg1: i32) -> (i32, i32) {
    %c1_i32 = arith.constant 1 : i32
    %0 = arith.muli %arg0, %c1_i32 : i32
    %1 = arith.addi %0, %arg1 : i32
    %c0_i32 = arith.constant 0 : i32
    %c0_i32_0 = arith.constant 0 : i32
    return %1, %c0_i32 : i32, i32
  }
  func.func @transform_1(%arg0: i32, %arg1: i32) -> (i32, i32) {
    %c1_i32 = arith.constant 1 : i32
    %0 = arith.muli %arg0, %c1_i32 : i32
    %1 = arith.addi %0, %arg1 : i32
    %c0_i32 = arith.constant 0 : i32
    %c0_i32_0 = arith.constant 0 : i32
    return %1, %c0_i32 : i32, i32
  }
  func.func @transform_2(%arg0: i32, %arg1: i32) -> (i32, i32) {
    %c0_i32 = arith.constant 0 : i32
    %c0_i32_0 = arith.constant 0 : i32
    %c0_i32_1 = arith.constant 0 : i32
    return %c0_i32, %c0_i32_0 : i32, i32
  }
  func.func @transform_3(%arg0: i32, %arg1: i32) -> (i32, i32) {
    %c0_i32 = arith.constant 0 : i32
    %c0_i32_0 = arith.constant 0 : i32
    %c0_i32_1 = arith.constant 0 : i32
    return %c0_i32, %c0_i32_0 : i32, i32
  }
  func.func @transform_4(%arg0: i32, %arg1: i32) -> (i32, i32, i32) {
    %c0_i32 = arith.constant 0 : i32
    %c0_i32_0 = arith.constant 0 : i32
    %c0_i32_1 = arith.constant 0 : i32
    return %arg0, %c0_i32, %c0_i32_0 : i32, i32, i32
  }
}

</mosaic_0001>

<bundles_post_ra>
// kernel: tpu_custom_call.1
= control target key start
LH: loop header
LB: loop body
LE: loop exit
PB: predicated region body
PF: predicated region fallthrough
CT: control target
= control target key end

     0   :  { %9 = vsyncpa [#allocation3], 0  ;;  %s282_s0 = inlined_call_operand.hbm [shape: f32[16,64], index: 0, kind: input, shape index: {}]   ;;  %s283_s1 = inlined_call_operand.hbm [shape: f32[16,64], index: 1, kind: input, shape index: {}]   ;;  %s284_s2 = inlined_call_operand.vmem [shape: f32[1,64], index: 2, kind: input, shape index: {}]   ;;  %s285_s3 = inlined_call_operand.vmem [shape: f32[1,64], index: 3, kind: input, shape index: {}]   ;;  %s286_s4 = inlined_call_operand.hbm [shape: f32[1,8,64], index: 4, kind: output, shape index: {}]  }
   0x1   :  { %10 = vsyncpa [#allocation6], 0 }
   0x2   :  { %11 = vsyncpa [#allocation4], 0  ;;  %s205_s15 = smov [#allocation2]   ;;  %s133_s19 = scalar_lea.hbm %s282_s0, 256 }
   0x3   :  { %s21_s16 = sshll.u32 %s205_s15, 4  ;;  %p134_p0 = scmp.ne.s32.totalorder %s282_s0, %s133_s19  ;;  %s22_s16 = int_to_ptr.vmem [resolvable:$true] %s21_s16 }
   0x4   :  { %p137_p1 = scmp.lt.u32.totalorder %s133_s19, %s282_s0 }
   0x6   :  { %p139_p2 = pnand %p137_p1, %p134_p0 }
   0x8   :  { %142 = shalt.err (!%p139_p2)
}
   0x9   :  { %s143_s24 = scalar_lea.vmem %s22_s16, 256  ;;  %p148_p4 = scmp.lt.s32.totalorder %s22_s16, %s22_s16 }
   0xa   :  { %p144_p3 = scmp.ne.s32.totalorder %s22_s16, %s143_s24  ;;  %p149_p5 = scmp.lt.s32.totalorder %s143_s24, %s143_s24 }
   0xc   :  { %p150_p6 = por %p149_p5, %p148_p4 }
   0xe   :  { %p151_p7 = pnand %p150_p6, %p144_p3 }
  0x10   :  { %154 = shalt.err (!%p151_p7)
}
  0x11   :  { %s206_s25 = smov 128   ;;  %s207_s26 = smov 8  }
  0x12   :  { %27 = dma.hbm_to_vmem [thread:$0]  %s282_s0, 256, %s22_s16, [#allocation3], %s206_s25, %s206_s25, %s207_s26  }
  0x13   :  { %s208_s29 = smov [#allocation5]   ;;  %s155_s7 = scalar_lea.hbm %s283_s1, 256 }
  0x14   :  { %s37_s30 = sshll.u32 %s208_s29, 4  ;;  %p156_p8 = scmp.ne.s32.totalorder %s283_s1, %s155_s7  ;;  %s38_s30 = int_to_ptr.vmem [resolvable:$true] %s37_s30 }
  0x15   :  { %p159_p9 = scmp.lt.u32.totalorder %s155_s7, %s283_s1 }
  0x17   :  { %p161_p10 = pnand %p159_p9, %p156_p8 }
  0x19   :  { %164 = shalt.err (!%p161_p10)
}
  0x1a   :  { %s165_s12 = scalar_lea.vmem %s38_s30, 256  ;;  %p170_p12 = scmp.lt.s32.totalorder %s38_s30, %s38_s30 }
  0x1b   :  { %p166_p11 = scmp.ne.s32.totalorder %s38_s30, %s165_s12  ;;  %p171_p13 = scmp.lt.s32.totalorder %s165_s12, %s165_s12 }
  0x1d   :  { %p172_p0 = por %p171_p13, %p170_p12 }
  0x1f   :  { %p173_p1 = pnand %p172_p0, %p166_p11 }
  0x21   :  { %176 = shalt.err (!%p173_p1)
}
  0x22   :  { %43 = dma.hbm_to_vmem [thread:$0]  %s283_s1, 256, %s38_s30, [#allocation6], %s206_s25, %s206_s25, %s207_s26  }
  0x23   :  { %199 = dma.done.wait [#allocation3], 256  }
  0x24   :  { %200 = vsyncadd [#allocation3], 4294967040 }
  0x25   :  { %201 = dma.done.wait [#allocation6], 256  }
  0x26   :  { %202 = vsyncadd [#allocation6], 4294967040  ;;  %vm62_vm0 = vcmask 523264   ;;  %v209_v0 = vmov 0.0   ;;  %v64_v1 = vld [vmem:[#allocation2] sm:$0xff]  ;;  %v65_v2 = vld [vmem:[#allocation2 + $0x8] sm:$0xff] }
  0x27   :  { %63 = vst.msk [vmem:[#allocation7] sm:$0xff] %vm62_vm0, %v209_v0  ;;  %v66_v3 = vld [vmem:[#allocation5] sm:$0xff]  ;;  %v67_v4 = vld [vmem:[#allocation5 + $0x8] sm:$0xff]  ;;  %v121_v5 = vld [vmem:[%s284_s2] ss:$0 sm:$0xff]  ;;  %s210_s2 = smov [#allocation7]  }
  0x28   :  { %129 = vlog2.f32 %v66_v3  ;;  %v76_v6 = vsub.f32 %v64_v1, %v121_v5  ;;  %v77_v7 = vsub.f32 %v65_v2, %v121_v5  ;;  %v78_v8 = vmul.f32 %v66_v3, %v66_v3  ;;  %v122_v13 = vld [vmem:[%s285_s3] ss:$0 sm:$0xff]  ;;  %s111_s17 = sshll.u32 %s210_s2, 4  ;;  %s112_s17 = int_to_ptr.vmem [resolvable:$true] %s111_s17 }
  0x29   :  { %131 = vlog2.f32 %v67_v4  ;;  %v79_v9 = vmul.f32 %v67_v4, %v67_v4  ;;  %s177_s3 = scalar_lea.vmem %s112_s17, 128  ;;  %p182_p3 = scmp.lt.s32.totalorder %s112_s17, %s112_s17 }
  0x2a   :  { %v80_v10 = vmul.f32 %v76_v6, %v76_v6  ;;  %v81_v11 = vmul.f32 %v77_v7, %v77_v7  ;;  %p178_p2 = scmp.ne.s32.totalorder %s112_s17, %s177_s3  ;;  %p183_p4 = scmp.lt.s32.totalorder %s177_s3, %s177_s3 }
  0x2c   :  { %v82_v12 = vadd.f32 %v80_v10, %v78_v8  ;;  %v83_v14 = vadd.f32 %v81_v11, %v79_v9  ;;  %p184_p5 = por %p183_p4, %p182_p3 }
  0x2e   :  { %v90_v15 = vmul.f32 %v122_v13, %v82_v12  ;;  %v91_v17 = vmul.f32 %v122_v13, %v83_v14  ;;  %v98_v25 = vld [vmem:[#allocation7] sm:$0xff]  ;;  %p185_p6 = pnand %p184_p5, %p178_p2 }
  0x32   :  { %v130_v16 = vpop.eup %129 }
  0x33   :  { %v132_v18 = vpop.eup %131  ;;  %v93_v19 = vmul.f32 0.6931472, %v130_v16 }
  0x34   :  { %v95_v20 = vmul.f32 0.6931472, %v132_v18 }
  0x35   :  { %v96_v21 = vsub.f32 %v90_v15, %v93_v19 }
  0x36   :  { %v97_v22 = vsub.f32 %v91_v17, %v95_v20 }
  0x37   :  { %v100_v23 = vsel %vm62_vm0, %v96_v21, 0.0 }
  0x38   :  { %v101_v24 = vsel %vm62_vm0, %v97_v22, 0.0 }
  0x39   :  { %v102_v26 = vadd.f32 %v101_v24, %v100_v23 }
  0x3b   :  { %v103_v27 = vadd.f32 %v102_v26, %v98_v25 }
  0x3d   :  { %104 = vst.msk [vmem:[#allocation7] sm:$0xff] %vm62_vm0, %v103_v27 }
  0x3e   :  { %188 = shalt.err (!%p185_p6)
}
  0x3f   :  { %s189_s20 = scalar_lea.hbm %s286_s4, 128 }
  0x40   :  { %p190_p7 = scmp.ne.s32.totalorder %s286_s4, %s189_s20  ;;  %p193_p8 = scmp.lt.u32.totalorder %s189_s20, %s286_s4 }
  0x42   :  { %p195_p9 = pnand %p193_p8, %p190_p7 }
  0x44   :  { %198 = shalt.err (!%p195_p9)
}
  0x45   :  { %114 = dma.vmem_to_hbm [thread:$0]  %s112_s17, 128, %s286_s4, [#allocation4]  }
  0x46   :  { %203 = dma.done.wait [#allocation4], 128  }
  0x47   :  { %204 = vsyncadd [#allocation4], 4294967168 }
  0x48   :  { %118 = vsyncpa [#allocation3], 1 }
  0x49   :  { %119 = vsyncpa [#allocation6], 1 }
  0x4a   :  { %120 = vsyncpa [#allocation4], 1 }

</bundles_post_ra>
